<compile_context>
chip_gen: v7x
topology: tpu7x:2x2x1
jax: 0.10.0
libtpu: 0.0.40
codegen_flags: <defaults>
</compile_context>

<pallas_src>
import jax
import jax.numpy as jnp
from jax.experimental import pallas as pl
from jax.experimental.pallas import tpu as pltpu

_LANE = 128
_SUBLANE = 8


def _round_up(x, m):
    return -(-x // m) * m


def _cdiv(a, b):
    return -(-a // b)


def _vmem_capacity_bytes():
    # Generation-aware physical VMEM (128 MiB on v5e/v6e, 64 MiB per TC on v7x).
    try:
        cap = int(pltpu.get_tpu_info().vmem_capacity_bytes)
    except Exception:
        cap = 64 * 1024 * 1024  # safe lower bound (v7x per-core)
    return max(cap, 64 * 1024 * 1024)


_VMEM_CAPACITY = _vmem_capacity_bytes()
_VMEM_SOFT_BUDGET = _VMEM_CAPACITY // 2          # ~64 MiB v5e/v6e, ~32 MiB v7x
_VMEM_LIMIT_CAP = (_VMEM_CAPACITY // 4) * 3      # headroom for Mosaic scratch


def _vmem_limit(bytes_needed):
    want = int(bytes_needed * 1.25) + (2 << 20)
    return int(min(max(want, 32 << 20), _VMEM_LIMIT_CAP))


# ---------------------------------------------------------------------------
# Kernel bodies
# ---------------------------------------------------------------------------

def _make_noacc_kernel(use_bf16):
    """Full-K panels resident in VMEM -> one MXU dot straight into the output."""
    def kernel(p_ref, w_ref, o_ref):
        p = p_ref[...]
        x = w_ref[...]
        if use_bf16:  # trace-time branch: in-VMEM cast feeds the bf16-native MXU
            p = p.astype(jnp.bfloat16)
            x = x.astype(jnp.bfloat16)
        o_ref[...] = jnp.dot(p, x, preferred_element_type=jnp.float32).astype(o_ref.dtype)
    return kernel


def _make_acc_kernel(use_bf16, use_scratch):
    """K-accumulation fallback (huge K). Accumulates into o_ref when it is f32."""
    if use_scratch:
        def kernel(p_ref, w_ref, o_ref, acc_ref):
            @pl.when(pl.program_id(2) == 0)
            def _():
                acc_ref[...] = jnp.zeros_like(acc_ref)

            p = p_ref[...]
            x = w_ref[...]
            if use_bf16:
                p = p.astype(jnp.bfloat16)
                x = x.astype(jnp.bfloat16)
            acc_ref[...] += jnp.dot(p, x, preferred_element_type=jnp.float32)

            @pl.when(pl.program_id(2) == pl.num_programs(2) - 1)
            def _():
                o_ref[...] = acc_ref[...].astype(o_ref.dtype)
    else:
        def kernel(p_ref, w_ref, o_ref):
            @pl.when(pl.program_id(2) == 0)
            def _():
                o_ref[...] = jnp.zeros_like(o_ref)

            p = p_ref[...]
            x = w_ref[...]
            if use_bf16:
                p = p.astype(jnp.bfloat16)
                x = x.astype(jnp.bfloat16)
            o_ref[...] += jnp.dot(p, x, preferred_element_type=jnp.float32)
    return kernel


def _diag_scale_kernel(d_ref, w_ref, o_ref):
    # Pure VPU: per-row scale of w by diag(P). Memory-bound streaming of w.
    o_ref[...] = (d_ref[...] * w_ref[...]).astype(o_ref.dtype)


# ---------------------------------------------------------------------------
# Wrappers
# ---------------------------------------------------------------------------

def _pick_column_tile(N, tn_max):
    """Lane-dense column tile; guarantee >=2 steps on the parallel N axis."""
    tn = min(tn_max, _round_up(N, _LANE))
    if N > _LANE and _cdiv(N, tn) < 2:
        tn = max(_LANE, _round_up(_cdiv(N, 2), _LANE))
    return tn


def linear_simple(P, w, *, use_bf16=False):
    """out = P @ w for a general dense parameter P (forward of LinearSimple).

    use_bf16=True casts tiles to bfloat16 inside the kernel (MXU-native,
    ~3-4x throughput on v6e/v7x) at an accuracy cost vs. the f32 reference.
    """
    S, K = P.shape
    K2, N = w.shape
    assert K == K2, "inner dimensions of P and w must match"
    out_dtype = w.dtype

    p_isz = P.dtype.itemsize
    w_isz = w.dtype.itemsize
    o_isz = jnp.dtype(out_dtype).itemsize
    budget = _VMEM_SOFT_BUDGET

    def noacc_vmem(tm_, tn_):
        b = 2 * (tm_ * K * p_isz + K * tn_ * w_isz + tm_ * tn_ * o_isz)
        if use_bf16:
            b += 2 * (tm_ * K + K * tn_)  # bf16 copies of the cast tiles
        return b

    tn0 = _pick_column_tile(N, 1024)
    tn_candidates = [tn0] + [t for t in (512, 256, 128) if t < tn0]
    # Prefer tm == S: whole P row panel resident, w streamed from HBM once.
    tm_candidates = [S] + [t for t in (512, 256, 128, 64, 32, 16, 8) if t < S]

    chosen = None
    for tm_c in tm_candidates:
        for tn_c in tn_candidates:
            if noacc_vmem(tm_c, tn_c) <= budget:
                chosen = (tm_c, tn_c)
                break
        if chosen is not None:
            break

    cost_out_bytes = S * N * o_isz

    if chosen is not None:
        # ---------------- full-K, no-accumulator path ----------------
        tm, tn = chosen
        grid_m, grid_n = _cdiv(S, tm), _cdiv(N, tn)

        # Grid order: re-read the cheaper operand. Rows-outer re-reads w
        # grid_m times; cols-outer re-reads P grid_n times.
        bytes_rows_outer = grid_m * K * N * w_isz + S * K * p_isz
        bytes_cols_outer = grid_n * S * K * p_isz + K * N * w_isz
        rows_outer = bytes_rows_outer <= bytes_cols_outer

        if rows_outer:
            grid = (grid_m, grid_n)
            p_spec = pl.BlockSpec((tm, K), lambda i, j: (i, 0))
            w_spec = pl.BlockSpec((K, tn), lambda i, j: (0, j))
            o_spec = pl.BlockSpec((tm, tn), lambda i, j: (i, j))
        else:
            grid = (grid_n, grid_m)
            p_spec = pl.BlockSpec((tm, K), lambda j, i: (i, 0))
            w_spec = pl.BlockSpec((K, tn), lambda j, i: (0, j))
            o_spec = pl.BlockSpec((tm, tn), lambda j, i: (i, j))

        cost = pl.CostEstimate(
            flops=2 * S * K * N,
            transcendentals=0,
            bytes_accessed=min(bytes_rows_outer, bytes_cols_outer) + cost_out_bytes,
        )
        return pl.pallas_call(
            _make_noacc_kernel(use_bf16),
            out_shape=jax.ShapeDtypeStruct((S, N), out_dtype),
            grid_spec=pltpu.PrefetchScalarGridSpec(
                num_scalar_prefetch=0,
                grid=grid,
                in_specs=[p_spec, w_spec],
                out_specs=o_spec,
            ),
            compiler_params=pltpu.CompilerParams(
                dimension_semantics=("parallel", "parallel"),
                vmem_limit_bytes=_vmem_limit(noacc_vmem(tm, tn)),
            ),
            cost_estimate=cost,
        )(P, w)

    # ---------------- K-accumulation fallback (very large K) ----------------
    tm = min(256, _round_up(S, _SUBLANE))
    tn = min(512, tn0)
    tk = 512
    Kp = _round_up(K, tk)
    # Zero-pad only along K (needed so the reduction never touches garbage).
    Pp = P if Kp == K else jnp.pad(P, ((0, 0), (0, Kp - K)))
    wp = w if Kp == K else jnp.pad(w, ((0, Kp - K), (0, 0)))

    use_scratch = jnp.dtype(out_dtype) != jnp.dtype(jnp.float32)
    acc_vmem = 2 * (tm * tk * p_isz + tk * tn * w_isz + tm * tn * o_isz)
    if use_scratch:
        acc_vmem += tm * tn * 4
    if use_bf16:
        acc_vmem += 2 * (tm * tk + tk * tn)

    cost = pl.CostEstimate(
        flops=2 * S * Kp * N,
        transcendentals=0,
        bytes_accessed=S * Kp * p_isz + Kp * N * w_isz + cost_out_bytes,
    )
    return pl.pallas_call(
        _make_acc_kernel(use_bf16, use_scratch),
        out_shape=jax.ShapeDtypeStruct((S, N), out_dtype),
        grid_spec=pltpu.PrefetchScalarGridSpec(
            num_scalar_prefetch=0,
            grid=(_cdiv(S, tm), _cdiv(N, tn), Kp // tk),
            in_specs=[
                pl.BlockSpec((tm, tk), lambda i, j, k: (i, k)),
                pl.BlockSpec((tk, tn), lambda i, j, k: (k, j)),
            ],
            out_specs=pl.BlockSpec((tm, tn), lambda i, j, k: (i, j)),
            scratch_shapes=([pltpu.VMEM((tm, tn), jnp.float32)] if use_scratch else []),
        ),
        compiler_params=pltpu.CompilerParams(
            dimension_semantics=("parallel", "parallel", "arbitrary"),
            vmem_limit_bytes=_vmem_limit(acc_vmem),
        ),
        cost_estimate=cost,
    )(Pp, wp)


def linear_simple_diag(diag_p, w):
    """out = diag(diag_p) @ w — VPU row-scale fast path.

    Valid only while P is exactly diagonal, which is the structure produced by
    LinearSimple.__init__ (eye + eye * noise / s0). Once P is trained/dense,
    use linear_simple instead.
    """
    S = diag_p.shape[0]
    K, N = w.shape
    assert K == S, "diag(P) length must match w's leading dim"
    out_dtype = w.dtype
    w_isz = w.dtype.itemsize
    o_isz = jnp.dtype(out_dtype).itemsize
    budget = _VMEM_SOFT_BUDGET

    d2 = diag_p.reshape(S, 1).astype(jnp.float32)

    # Row tile: keep the whole diag column resident when rows are few.
    tm = S if S <= 1024 else 512

    # Column tile: target multi-MiB lane-dense w blocks (this path is purely
    # HBM-bound, so block size is the only lever), within the VMEM budget.
    target_elems = (4 << 20) // max(w_isz, 1)
    tn = min(_round_up(N, _LANE), max(_LANE, (target_elems // max(tm, 1)) // _LANE * _LANE))

    def diag_vmem(tn_):
        return 2 * (tm * 4 + tm * tn_ * w_isz + tm * tn_ * o_isz)

    while tn > _LANE and diag_vmem(tn) > budget:
        tn = max((tn // 2) // _LANE * _LANE, _LANE)
    # >= 2 steps on the parallel N axis so both v7x TensorCores get work.
    if N > _LANE and _cdiv(N, tn) < 2:
        tn = max(_LANE, _round_up(_cdiv(N, 2), _LANE))

    grid = (_cdiv(S, tm), _cdiv(N, tn))
    if tm == S:
        d_spec = pl.BlockSpec((S, 1), lambda i, j: (0, 0))   # fetched once, resident
    else:
        d_spec = pl.BlockSpec((tm, 1), lambda i, j: (i, 0))

    cost = pl.CostEstimate(
        flops=S * N,
        transcendentals=0,
        bytes_accessed=S * 4 + S * N * (w_isz + o_isz),
    )
    return pl.pallas_call(
        _diag_scale_kernel,
        out_shape=jax.ShapeDtypeStruct((S, N), out_dtype),
        grid_spec=pltpu.PrefetchScalarGridSpec(
            num_scalar_prefetch=0,
            grid=grid,
            in_specs=[d_spec, pl.BlockSpec((tm, tn), lambda i, j: (i, j))],
            out_specs=pl.BlockSpec((tm, tn), lambda i, j: (i, j)),
        ),
        compiler_params=pltpu.CompilerParams(
            dimension_semantics=("parallel", "parallel"),
            vmem_limit_bytes=_vmem_limit(diag_vmem(tn)),
        ),
        cost_estimate=cost,
    )(d2, w)


def init_linear_simple_params(key, s0, dtype=jnp.float32):
    """Replicate the torch __init__: P = eye(s0) + eye(s0) * randn(s0, s0) / s0
    (elementwise product with eye -> purely diagonal noise)."""
    noise = jax.random.normal(key, (s0, s0), dtype=dtype)
    eye = jnp.eye(s0, dtype=dtype)
    return eye + eye * noise / s0


if __name__ == "__main__":
    key = jax.random.PRNGKey(0)
    k_p, k_w = jax.random.split(key)

    S = 128   # s[0]
    N = 256   # trailing dim of w

    P = init_linear_simple_params(k_p, S)
    w = jax.random.normal(k_w, (S, N), dtype=jnp.float32)
    ref = P @ w

    # General dense-P path (faithful to forward(w) = P @ w for any P).
    out_dense = jax.block_until_ready(linear_simple(P, w))
    assert out_dense.shape == (S, N)
    assert jnp.allclose(out_dense, ref, atol=1e-4, rtol=1e-4), "dense path mismatch"

    # Diagonal fast path (exploits the init structure of P).
    out_diag = jax.block_until_ready(linear_simple_diag(jnp.diagonal(P), w))
    assert out_diag.shape == (S, N)
    assert jnp.allclose(out_diag, ref, atol=1e-4, rtol=1e-4), "diag path mismatch"

    # Non-multiple trailing dim -> partial boundary blocks (no pad/slice copies).
    w2 = jax.random.normal(jax.random.PRNGKey(1), (S, 200), dtype=jnp.float32)
    out2 = jax.block_until_ready(linear_simple(P, w2))
    assert out2.shape == (S, 200)
    assert jnp.allclose(out2, P @ w2, atol=1e-4, rtol=1e-4), "padded-free path mismatch"

    # Optional bf16 MXU path (documented accuracy tradeoff, looser tolerance).
    out_bf16 = jax.block_until_ready(linear_simple(P, w, use_bf16=True))
    assert jnp.allclose(out_bf16, ref, atol=5e-2, rtol=2e-2), "bf16 path mismatch"

    print("KERNEL_OK")
</pallas_src>

<mosaic_0001>
module attributes {stable_mosaic.version = 11 : i64} {
  func.func @kernel(%arg0: i32, %arg1: i32, %arg2: memref<128x128xf32, #tpu.memory_space<vmem>>, %arg3: memref<128x128xf32, #tpu.memory_space<vmem>>, %arg4: memref<128x128xf32, #tpu.memory_space<vmem>>) attributes {dimension_semantics = [#tpu.dimension_semantics<parallel>, #tpu.dimension_semantics<parallel>], iteration_bounds = array<i64: 1, 2>, scalar_prefetch = 0 : i64, scratch_operands = 0 : i64, tpu.core_type = #tpu.core_type<tc>, window_params = [{transform_indices = @transform_0, window_bounds = array<i64: 128, 128>}, {transform_indices = @transform_1, window_bounds = array<i64: 128, 128>}, {transform_indices = @transform_2, window_bounds = array<i64: 128, 128>}]} {
    %c0 = arith.constant 0 : index
    %c0_0 = arith.constant 0 : index
    %0 = vector.load %arg2[%c0, %c0_0] : memref<128x128xf32, #tpu.memory_space<vmem>>, vector<128x128xf32>
    %c0_1 = arith.constant 0 : index
    %c0_2 = arith.constant 0 : index
    %1 = vector.load %arg3[%c0_1, %c0_2] : memref<128x128xf32, #tpu.memory_space<vmem>>, vector<128x128xf32>
    %cst = arith.constant dense<0.000000e+00> : vector<128x128xf32>
    %2 = tpu.matmul %0, %1, %cst {dimension_numbers = #tpu.dot_dimension_numbers<[1], [0], [0], [1], [0, 0, 1, 1], [], []>} : vector<128x128xf32>, vector<128x128xf32>, vector<128x128xf32> -> vector<128x128xf32>
    %c0_3 = arith.constant 0 : index
    %c0_4 = arith.constant 0 : index
    %3 = vector.load %arg4[%c0_3, %c0_4] : memref<128x128xf32, #tpu.memory_space<vmem>>, vector<128x128xf32>
    tpu.vector_store %arg4[%c0_3, %c0_4], %2 {strides = array<i32>} : memref<128x128xf32, #tpu.memory_space<vmem>>, vector<128x128xf32>,
    return
  }
  func.func @transform_0(%arg0: i32, %arg1: i32) -> (i32, i32) {
    %c0_i32 = arith.constant 0 : i32
    %c0_i32_0 = arith.constant 0 : i32
    return %arg0, %c0_i32 : i32, i32
  }
  func.func @transform_1(%arg0: i32, %arg1: i32) -> (i32, i32) {
    %c0_i32 = arith.constant 0 : i32
    %c0_i32_0 = arith.constant 0 : i32
    return %c0_i32, %arg1 : i32, i32
  }
  func.func @transform_2(%arg0: i32, %arg1: i32) -> (i32, i32) {
    %c0_i32 = arith.constant 0 : i32
    return %arg0, %arg1 : i32, i32
  }
}

</mosaic_0001>

<bundles_post_ra>
// kernel: tpu_custom_call.1
= control target key start
LH: loop header
LB: loop body
LE: loop exit
PB: predicated region body
PF: predicated region fallthrough
CT: control target
= control target key end

     0   :  { %7 = vsyncpa [#allocation3], 0  ;;  %s1172_s0 = inlined_call_operand.hbm [shape: f32[128,128], index: 0, kind: input, shape index: {}]   ;;  %s1173_s1 = inlined_call_operand.hbm [shape: f32[128,256], index: 1, kind: input, shape index: {}]   ;;  %s1174_s2 = inlined_call_operand.hbm [shape: f32[128,256], index: 2, kind: output, shape index: {}]  }
   0x1   :  { %8 = vsyncpa [#allocation6], 0 }
   0x2   :  { %10 = vsyncpa [#allocation6 + $0x1], 0 }
   0x3   :  { %11 = vsyncpa [#allocation4], 0 }
   0x4   :  { %13 = vsyncpa [#allocation4 + $0x1], 0  ;;  %s906_s9 = smov 0   ;;  %s908_s10 = smov 0  }
   0x5   :  { %s910_s11 = smov 0   ;;  %s912_s12 = smov 0  }
   0x6   :  { %s914_s13 = smov 0   ;;  %s916_s14 = smov 0  }
   0x7 LB: > { %s506_s15 = sadd.s32 4294967295, %s880_s14   ;;  %s507_s16 = sadd.s32 4294967294, %s880_s14   ;;  %s880_s14 = sphi %s916_s14, %s19_s14   ;;  %s876_s13 = sphi %s914_s13, %s1200_s13   ;;  %s872_s12 = sphi %s912_s12, %s1199_s12   ;;  %s868_s11 = sphi %s910_s11, %s1198_s11   ;;  %s864_s10 = sphi %s908_s10, %s1197_s10   ;;  %s860_s9 = sphi %s906_s9, %s1196_s9  }
   0x8   : > { %p71_p0 = scmp.ne.s32.totalorder %s868_s11, %s864_s10  ;;  %p72_p1 = scmp.eq.s32.totalorder %s880_s14, 0 }
   0x9   : > { %p77_p2 = scmp.ne.s32.totalorder %s864_s10, %s860_s9  ;;  %p943_p3 = scmp.eq.s32.totalorder %s506_s15, 0 }
   0xa   : > { %p947_p4 = por %p72_p1, %p71_p0  ;;  %p103_p5 = scmp.eq.s32.totalorder %s506_s15, 1 }
   0xb   : > { %s1181_s17 = scalar_select %p943_p3, 1, 0 }
   0xc   : > { %p953_p6 = por %p943_p3, %p77_p2  ;;  %p109_p7 = scmp.eq.s32.totalorder %s507_s16, 1 }
   0xd   : > { %p957_p8 = por %p103_p5, %p71_p0  ;;  %p508_p9 = scmp.ge.s32.totalorder %s880_s14, 1 }
   0xe   : > { %s1183_s19 = scalar_select %p953_p6, 1, 0 }
   0xf   : > { %s1184_s20 = scalar_select %p957_p8, 1, 0 }
  0x10   : > { %p962_p10 = por %p109_p7, %p77_p2  ;;  %p116_p11 = scmp.lt.s32.totalorder %s880_s14, 3 }
  0x11   : > { %s882_s23 = smov [#allocation2]   ;;  %p678_p1 = scmp.lt.s32.totalorder %s880_s14, 2 }
  0x12   : > { %s1185_s21 = scalar_select %p962_p10, 1, 0 }
  0x13   : > { %p967_p12 = pnand %p508_p9, %p116_p11  ;;  %s131_s24 = sshll.u32 %s882_s23, 4  ;;  %s971_s24 = int_to_ptr.vmem [resolvable:$true] %s131_s24 }
  0x14   : > { %p985_p2 = pnand %p678_p1, %p947_p4  ;;  %s28_s27 = sadd.s32 1, %s876_s13 }
  0x15   : > { %s1186_s22 = scalar_select %p967_p12, 1, 0 }
  0x16   : > { %p665_p13 = pneg %p967_p12  ;;  %s736_s30 = scalar_lea.hbm %s1172_s0, 2048 }
  0x17   : > { %s1188_s26 = scalar_select %p985_p2, 1, 0 }
  0x18   : > { %p979_p5 = pnand %p665_p13, %p943_p3  ;;  %p737_p7 = scmp.ne.s32.totalorder %s1172_s0, %s736_s30 }
  0x19   : > { %p743_p4 = scmp.lt.u32.totalorder %s736_s30, %s1172_s0 }
  0x1a   : > { %p738_p9 = pneg %p979_p5 }
  0x1c   : > { %p739_p11 = pnand %p738_p9, %p737_p7 }
  0x1e   : > { %p740_p13 = pneg %p739_p11 }
  0x20   : > { %p745_p1 = pnand %p743_p4, %p740_p13 }
  0x22   : > { %748 = shalt.err (!%p745_p1)
}
  0x23   : > { %s749_s7 = scalar_lea.vmem %s971_s24, 2048  ;;  %p757_p6 = scmp.lt.s32.totalorder %s971_s24, %s971_s24 }
  0x24   : > { %p750_p0 = scmp.ne.s32.totalorder %s971_s24, %s749_s7  ;;  %p758_p3 = scmp.lt.s32.totalorder %s749_s7, %s749_s7 }
  0x26   : > { %p752_p10 = pnand %p750_p0, %p738_p9  ;;  %p759_p12 = por %p758_p3, %p757_p6 }
  0x28   : > { %p753_p8 = pneg %p752_p10 }
  0x2a   : > { %p760_p2 = pnand %p759_p12, %p753_p8 }
  0x2c   : > { %763 = shalt.err (!%p760_p2)
}
  0x2d   : > { %s883_s8 = smov 128   ;;  %s884_s15 = smov 8  }
  0x2e   : > { %668 = dma.hbm_to_vmem [thread:$0]  (!%p979_p5), %s1172_s0, 2048, %s971_s24, [#allocation3], %s883_s8, %s883_s8, %s884_s15  }
  0x2f   : > { %p29_p3 = scmp.ge.s32.totalorder %s28_s27, 2  ;;  %s64_s23 = sadd.s32 1, %s868_s11 }
  0x30   : > { %s145_s28 = sand.u32 1, %s868_s11   ;;  %s512_s3 = sshll.u32 %s876_s13, 7 }
  0x31   : > { %s1202_s27 = smov (%p29_p3, %s28_s27), 0  ;;  %s511_s29 = sshll.u32 %s145_s28, 7 }
  0x32   : > { %s61_s30 = ssub.s32 %s876_s13, %s1202_s27  ;;  %s1024_s5 = scalar_lea.hbm %s1173_s1, %s512_s3 }
  0x33   : > { %p62_p6 = scmp.eq.s32.totalorder %s61_s30, 0  ;;  %s149_s24 = scalar_lea.vmem [#allocation5], %s511_s29 }
  0x34   : > { %s155_s6 = sshll.u32 %s149_s24, 4  ;;  %s1031_s16 = scalar_lea.sflag [#allocation6], %s145_s28  ;;  %s1029_s6 = int_to_ptr.vmem [resolvable:$true] %s155_s6 }
  0x35   : > { %s1027_s7 = scalar_select %p62_p6, %s868_s11, %s64_s23  }
  0x36   : > { %s764_s18 = scalar_lea.hbm %s1024_s5, 2048  ;;  %p1189_p10 = scmp.ne.s32.totalorder %s1188_s26, 0 }
  0x37   : > { %p765_p8 = scmp.ne.s32.totalorder %s1024_s5, %s764_s18  ;;  %s769_s25 = scalar_lea.hbm %s1173_s1, 4096 }
  0x38   : > { %p766_p12 = pneg %p1189_p10  ;;  %p770_p2 = scmp.lt.u32.totalorder %s1024_s5, %s1173_s1 }
  0x39   : > { %p771_p7 = scmp.lt.u32.totalorder %s769_s25, %s764_s18  ;;  %p773_p11 = scmp.lt.u32.totalorder %s764_s18, %s1024_s5 }
  0x3a   : > { %p767_p0 = pnand %p766_p12, %p765_p8 }
  0x3b   : > { %p772_p9 = por %p771_p7, %p770_p2 }
  0x3c   : > { %p768_p5 = pneg %p767_p0 }
  0x3d   : > { %p774_p13 = por %p773_p11, %p772_p9 }
  0x3f   : > { %p775_p4 = pnand %p774_p13, %p768_p5 }
  0x41   : > { %778 = shalt.err (!%p775_p4)
}
  0x42   : > { %s779_s23 = scalar_lea.vmem %s1029_s6, 2048  ;;  %s885_s28 = smov [#allocation5]  }
  0x43   : > { %p780_p1 = scmp.ne.s32.totalorder %s1029_s6, %s779_s23  ;;  %s784_s24 = sshll.u32 %s885_s28, 4  ;;  %s785_s24 = int_to_ptr.vmem [resolvable:$false] %s784_s24 }
  0x44   : > { %s786_s30 = scalar_lea.vmem %s785_s24, 4096  ;;  %p787_p8 = scmp.lt.s32.totalorder %s1029_s6, %s785_s24 }
  0x45   : > { %p782_p3 = pnand %p780_p1, %p766_p12  ;;  %p788_p0 = scmp.lt.s32.totalorder %s786_s30, %s779_s23 }
  0x47   : > { %p783_p6 = pneg %p782_p3  ;;  %p789_p2 = por %p788_p0, %p787_p8 }
  0x49   : > { %p790_p7 = pnand %p789_p2, %p783_p6 }
  0x4b   : > { %793 = shalt.err (!%p790_p7)
}
  0x4c   : > { %s886_s18 = smov 256   ;;  %p1190_p12 = scmp.ne.s32.totalorder %s1186_s22, 0 }
  0x4d   : > { %672 = dma.hbm_to_vmem [thread:$0]  (!%p1189_p10), %s1024_s5, 2048, %s1029_s6, %s1031_s16, %s886_s18, %s883_s8, %s884_s15  }
  0x4e   : > { %167 = sbr.rel (%p1190_p12) target bundleno = 366 (0x16e), region = 28  ;;  %p1191_p5 = scmp.ne.s32.totalorder (!%p1190_p12), %s1181_s17, 0 }
  0x55   : > { %847 = dma.done.wait (%p1191_p5), [#allocation3], 2048  }
  0x56   : > { %849 = vsyncadd (%p1191_p5), [#allocation3], 4294965248  ;;  %s1068_s3 = sand.u32 1, %s864_s10   ;;  %p1192_p10 = scmp.ne.s32.totalorder %s1183_s19, 0 }
  0x57   : > { %s515_s26 = sshll.u32 %s1068_s3, 7  ;;  %s174_s25 = scalar_lea.sflag [#allocation6], %s1068_s3 }
  0x58   : > { %s1074_s8 = scalar_lea.vmem [#allocation5], %s515_s26 }
  0x59   : > { %851 = dma.done.wait (%p1192_p10), %s174_s25, 2048  }
  0x5a   : > { %853 = vsyncadd (%p1192_p10), %s174_s25, 4294965248  ;;  %v216_v0 = vld [vmem:[%s1074_s8] sm:$0xff]  ;;  %v217_v1 = vld [vmem:[%s1074_s8 + $0x8] sm:$0xff]  ;;  %s1098_s17 = scalar_lea.vmem [#allocation7], %s515_s26  ;;  %s518_s19 = sshll.u32 %s872_s12, 7 }
  0x5b   : > { %v218_v2 = vld [vmem:[%s1074_s8 + $0x10] sm:$0xff]  ;;  %v609_v3 = vpack.c.bf16 %v217_v1, %v216_v0  ;;  %v219_v4 = vld [vmem:[%s1074_s8 + $0x18] sm:$0xff]  ;;  %v220_v6 = vld [vmem:[%s1074_s8 + $0x20] sm:$0xff]  ;;  %s409_s22 = sshll.u32 %s1098_s17, 4  ;;  %s1117_s6 = scalar_lea.hbm %s1174_s2, %s518_s19  ;;  %s1119_s22 = int_to_ptr.vmem [resolvable:$true] %s409_s22 }
  0x5c   : > { %v613_v5 = vpack.c.bf16 %v219_v4, %v218_v2  ;;  %v221_v7 = vld [vmem:[%s1074_s8 + $0x28] sm:$0xff]  ;;  %v200_v9 = vld [vmem:[#allocation2] sm:$0xff]  ;;  %v222_v11 = vld [vmem:[%s1074_s8 + $0x30] sm:$0xff]  ;;  %s394_s12 = scalar_lea.sflag [#allocation4], %s1068_s3  ;;  %s794_s16 = scalar_lea.vmem %s1119_s22, 2048 }
  0x5d   : > { %610 = vmatprep.subr.bf16.mxu0 %v609_v3  ;;  %641 = vmatprep.subr.bf16.mxu1 %v609_v3  ;;  %v617_v8 = vpack.c.bf16 %v221_v7, %v220_v6  ;;  %v208_v10 = vld [vmem:[#allocation2 + $0x40] sm:$0xff]  ;;  %v223_v12 = vld [vmem:[%s1074_s8 + $0x38] sm:$0xff]  ;;  %v225_v15 = vld [vmem:[%s1074_s8 + $0x48] sm:$0xff]  ;;  %p795_p9 = scmp.ne.s32.totalorder %s1119_s22, %s794_s16  ;;  %p1193_p11 = scmp.ne.s32.totalorder %s1184_s20, 0 }
  0x5e   : > { %612 = vmatpush3.bf16.msra.mxu0 %v609_v3  ;;  %649 = vmatpush3.bf16.msra.mxu1 %v609_v3  ;;  %v621_v13 = vpack.c.bf16 %v223_v12, %v222_v11  ;;  %v224_v14 = vld [vmem:[%s1074_s8 + $0x40] sm:$0xff]  ;;  %v226_v17 = vld [vmem:[%s1074_s8 + $0x50] sm:$0xff]  ;;  %v227_v18 = vld [vmem:[%s1074_s8 + $0x58] sm:$0xff]  ;;  %s887_s29 = smov [#allocation7]  }
  0x5f   : > { %614 = vmatprep.subr.bf16.mxu0 %v613_v5  ;;  %642 = vmatprep.subr.bf16.mxu1 %v613_v5  ;;  %v625_v16 = vpack.c.bf16 %v225_v15, %v224_v14  ;;  %v629_v19 = vpack.c.bf16 %v227_v18, %v226_v17  ;;  %v228_v20 = vld [vmem:[%s1074_s8 + $0x60] sm:$0xff]  ;;  %v229_v21 = vld [vmem:[%s1074_s8 + $0x68] sm:$0xff]  ;;  %v230_v23 = vld [vmem:[%s1074_s8 + $0x70] sm:$0xff]  ;;  %p796_p13 = pnand %p795_p9, %p1193_p11  ;;  %s798_s4 = sshll.u32 %s887_s29, 4  ;;  %s799_s4 = int_to_ptr.vmem [resolvable:$false] %s798_s4 }
  0x60   : > { %585 = vmatprep.mubr.f32.mxu0 %v200_v9  ;;  %597 = vmatprep.mubr.f32.mxu1 %v208_v10  ;;  %v633_v22 = vpack.c.bf16 %v229_v21, %v228_v20  ;;  %v231_v24 = vld [vmem:[%s1074_s8 + $0x78] sm:$0xff]  ;;  %v201_v26 = vld [vmem:[#allocation2 + $0x8] sm:$0xff]  ;;  %v202_v28 = vld [vmem:[#allocation2 + $0x10] sm:$0xff]  ;;  %s800_s23 = scalar_lea.vmem %s799_s4, 4096  ;;  %p801_p1 = scmp.lt.s32.totalorder %s1119_s22, %s799_s4 }
  0x61   : > { %v637_v25 = vpack.c.bf16 %v231_v24, %v230_v23  ;;  %v209_v27 = vld [vmem:[#allocation2 + $0x48] sm:$0xff]  ;;  %v210_v29 = vld [vmem:[#allocation2 + $0x50] sm:$0xff]  ;;  %v203_v30 = vld [vmem:[#allocation2 + $0x18] sm:$0xff]  ;;  %p797_p4 = pneg %p796_p13  ;;  %p802_p3 = scmp.lt.s32.totalorder %s800_s23, %s794_s16 }
  0x62   : > { %616 = vmatpush3.bf16.msra.mxu0 %v613_v5  ;;  %650 = vmatpush3.bf16.msra.mxu1 %v613_v5  ;;  %v211_v31 = vld [vmem:[#allocation2 + $0x58] sm:$0xff]  ;;  %v204_v32 = vld [vmem:[#allocation2 + $0x20] sm:$0xff]  ;;  %v205_v34 = vld [vmem:[#allocation2 + $0x28] sm:$0xff] }
  0x63   : > { %618 = vmatprep.subr.bf16.mxu0 %v617_v8  ;;  %643 = vmatprep.subr.bf16.mxu1 %v617_v8  ;;  %v212_v33 = vld [vmem:[#allocation2 + $0x60] sm:$0xff]  ;;  %v213_v35 = vld [vmem:[#allocation2 + $0x68] sm:$0xff]  ;;  %v206_v36 = vld [vmem:[#allocation2 + $0x30] sm:$0xff]  ;;  %p803_p6 = por %p802_p3, %p801_p1 }
  0x64   : > { %v214_v37 = vld [vmem:[#allocation2 + $0x70] sm:$0xff]  ;;  %v207_v38 = vld [vmem:[#allocation2 + $0x38] sm:$0xff] }
  0x65   : > { %v215_v39 = vld [vmem:[#allocation2 + $0x78] sm:$0xff]  ;;  %p804_p8 = pnand %p803_p6, %p797_p4 }
  0x66   : > { %620 = vmatpush3.bf16.msra.mxu0 %v617_v8  ;;  %651 = vmatpush3.bf16.msra.mxu1 %v617_v8 }
  0x67   : > { %622 = vmatprep.subr.bf16.mxu0 %v621_v13  ;;  %644 = vmatprep.subr.bf16.mxu1 %v621_v13 }
  0x6a   : > { %624 = vmatpush3.bf16.msra.mxu0 %v621_v13  ;;  %652 = vmatpush3.bf16.msra.mxu1 %v621_v13 }
  0x6b   : > { %626 = vmatprep.subr.bf16.mxu0 %v625_v16  ;;  %645 = vmatprep.subr.bf16.mxu1 %v625_v16 }
  0x6e   : > { %628 = vmatpush3.bf16.msra.mxu0 %v625_v16  ;;  %653 = vmatpush3.bf16.msra.mxu1 %v625_v16 }
  0x6f   : > { %630 = vmatprep.subr.bf16.mxu0 %v629_v19  ;;  %646 = vmatprep.subr.bf16.mxu1 %v629_v19 }
  0x72   : > { %632 = vmatpush3.bf16.msra.mxu0 %v629_v19  ;;  %654 = vmatpush3.bf16.msra.mxu1 %v629_v19 }
  0x73   : > { %634 = vmatprep.subr.bf16.mxu0 %v633_v22  ;;  %647 = vmatprep.subr.bf16.mxu1 %v633_v22 }
  0x76   : > { %636 = vmatpush3.bf16.msra.mxu0 %v633_v22  ;;  %655 = vmatpush3.bf16.msra.mxu1 %v633_v22 }
  0x77   : > { %638 = vmatprep.subr.bf16.mxu0 %v637_v25  ;;  %648 = vmatprep.subr.bf16.mxu1 %v637_v25 }
  0x7a   : > { %640 = vmatpush3.bf16.msra.mxu0 %v637_v25  ;;  %656 = vmatpush3.bf16.msra.mxu1 %v637_v25 }
  0x7d   : > { %586 = vmatmul.mubr.f32.vlgmr.msra.gmra.mrb[0].mxu0 %v201_v26  ;;  %598 = vmatmul.mubr.f32.vlgmr.msra.gmra.mrb[0].mxu1 %v209_v27 }
  0x7e   : > { %588 = vmatprep.mubr.f32.mxu0 %v202_v28  ;;  %600 = vmatprep.mubr.f32.mxu1 %v210_v29 }
  0x81   : > { %589 = vmatmul.mubr.f32.gmra.mrb[2].mxu0 %v203_v30  ;;  %601 = vmatmul.mubr.f32.gmra.mrb[2].mxu1 %v211_v31 }
  0x82   : > { %591 = vmatprep.mubr.f32.mxu0 %v204_v32  ;;  %603 = vmatprep.mubr.f32.mxu1 %v212_v33 }
  0x85   : > { %592 = vmatmul.mubr.f32.gmra.mrb[4].mxu0 %v205_v34  ;;  %604 = vmatmul.mubr.f32.gmra.mrb[4].mxu1 %v213_v35 }
  0x86   : > { %594 = vmatprep.mubr.f32.mxu0 %v206_v36  ;;  %606 = vmatprep.mubr.f32.mxu1 %v214_v37 }
  0x89   : > { %595 = vmatmul.mubr.f32.gmra.mrb[6].mxu0 %v207_v38  ;;  %607 = vmatmul.mubr.f32.gmra.mrb[6].mxu1 %v215_v39 }
 0x150   : > { %v587_v40 = vpop.f32.mrb[0].mxu0  ;;  %v599_v41 = vpop.f32.mrb[0].mxu1 }
 0x151   : > { %378 = vst [vmem:[%s1098_s17 + $0x8] sm:$0xff] %v587_v40  ;;  %386 = vst [vmem:[%s1098_s17 + $0x48] sm:$0xff] %v599_v41  ;;  %v298_v42 = vpop.f32.mrb[1].mxu0  ;;  %v338_v43 = vpop.f32.mrb[1].mxu1 }
 0x152   : > { %377 = vst [vmem:[%s1098_s17] sm:$0xff] %v298_v42  ;;  %385 = vst [vmem:[%s1098_s17 + $0x40] sm:$0xff] %v338_v43 }
 0x154   : > { %v590_v44 = vpop.f32.mrb[2].mxu0  ;;  %v602_v45 = vpop.f32.mrb[2].mxu1 }
 0x155   : > { %380 = vst [vmem:[%s1098_s17 + $0x18] sm:$0xff] %v590_v44  ;;  %388 = vst [vmem:[%s1098_s17 + $0x58] sm:$0xff] %v602_v45  ;;  %v308_v46 = vpop.f32.mrb[3].mxu0  ;;  %v348_v47 = vpop.f32.mrb[3].mxu1 }
 0x156   : > { %379 = vst [vmem:[%s1098_s17 + $0x10] sm:$0xff] %v308_v46  ;;  %387 = vst [vmem:[%s1098_s17 + $0x50] sm:$0xff] %v348_v47 }
 0x158   : > { %v593_v48 = vpop.f32.mrb[4].mxu0  ;;  %v605_v49 = vpop.f32.mrb[4].mxu1 }
 0x159   : > { %382 = vst [vmem:[%s1098_s17 + $0x28] sm:$0xff] %v593_v48  ;;  %390 = vst [vmem:[%s1098_s17 + $0x68] sm:$0xff] %v605_v49  ;;  %v318_v50 = vpop.f32.mrb[5].mxu0  ;;  %v358_v51 = vpop.f32.mrb[5].mxu1 }
 0x15a   : > { %381 = vst [vmem:[%s1098_s17 + $0x20] sm:$0xff] %v318_v50  ;;  %389 = vst [vmem:[%s1098_s17 + $0x60] sm:$0xff] %v358_v51 }
 0x15c   : > { %v596_v52 = vpop.f32.mrb[6].mxu0  ;;  %v608_v53 = vpop.f32.mrb[6].mxu1 }
 0x15d   : > { %384 = vst [vmem:[%s1098_s17 + $0x38] sm:$0xff] %v596_v52  ;;  %392 = vst [vmem:[%s1098_s17 + $0x78] sm:$0xff] %v608_v53  ;;  %v328_v54 = vpop.f32.mrb[7].mxu0  ;;  %v368_v55 = vpop.f32.mrb[7].mxu1 }
 0x15e   : > { %383 = vst [vmem:[%s1098_s17 + $0x30] sm:$0xff] %v328_v54  ;;  %391 = vst [vmem:[%s1098_s17 + $0x70] sm:$0xff] %v368_v55 }
 0x15f   : > { %807 = shalt.err (!%p804_p8)
}
 0x160   : > { %s808_s28 = scalar_lea.hbm %s1117_s6, 2048  ;;  %s812_s18 = scalar_lea.hbm %s1174_s2, 4096 }
 0x161   : > { %p809_p0 = scmp.ne.s32.totalorder %s1117_s6, %s808_s28  ;;  %p813_p12 = scmp.lt.u32.totalorder %s1117_s6, %s1174_s2 }
 0x162   : > { %p814_p5 = scmp.lt.u32.totalorder %s812_s18, %s808_s28  ;;  %p816_p9 = scmp.lt.u32.totalorder %s808_s28, %s1117_s6 }
 0x163   : > { %p810_p2 = pnand %p809_p0, %p1193_p11 }
 0x164   : > { %p815_p10 = por %p814_p5, %p813_p12 }
 0x165   : > { %p811_p7 = pneg %p810_p2 }
 0x166   : > { %p817_p13 = por %p816_p9, %p815_p10 }
 0x168   : > { %p818_p4 = pnand %p817_p13, %p811_p7 }
 0x16a   : > { %821 = shalt.err (!%p818_p4)
}
 0x16b   : > { %s888_s8 = smov 128   ;;  %s889_s17 = smov 256  }
 0x16c   : > { %s890_s19 = smov 8  }
 0x16d   : > { %663 = dma.vmem_to_hbm [thread:$0]  (%p1193_p11), %s1119_s22, 2048, %s1117_s6, %s394_s12, %s888_s8, %s889_s17, %s890_s19  }
 0x16e PF: > { %s424_s15 = sand.u32 1, %s860_s9   ;;  %p1194_p1 = scmp.ne.s32.totalorder %s1185_s21, 0 }
 0x16f   : > { %p1195_p3 = scmp.ge.s32.totalorder %s880_s14, 2  ;;  %s425_s5 = scalar_lea.sflag [#allocation4], %s424_s15 }
 0x171   : > { %p674_p6 = pnand %p1195_p3, %p1194_p1 }
 0x173   : > { %855 = dma.done.wait (!%p674_p6), %s425_s5, 2048  }
 0x174   : > { %857 = vsyncadd (!%p674_p6), %s425_s5, 4294965248  ;;  %s19_s14 = sadd.s32 1, %s880_s14   ;;  %s1196_s9 = smov %s864_s10 }
 0x175   : > { %p16_p8 = scmp.ge.s32.totalorder %s19_s14, 4   ;;  %s1197_s10 = smov %s868_s11 }
 0x176   : > { %s1198_s11 = smov %s1027_s7  ;;  %s1199_s12 = smov %s876_s13 }
 0x177   : > { %s1200_s13 = smov %s1202_s27  ;;  %18 = sbr.rel (!%p16_p8) target bundleno = 7 (0x7), region = 79 }
 0x17e   :  { %430 = vsyncpa [#allocation3], 1 }
 0x17f   :  { %432 = vsyncpa [#allocation3 + $0x1], 1 }
 0x180   :  { %433 = vsyncpa [#allocation6], 1 }
 0x181   :  { %435 = vsyncpa [#allocation6 + $0x1], 1 }
 0x182   :  { %436 = vsyncpa [#allocation4], 1 }
 0x183   :  { %438 = vsyncpa [#allocation4 + $0x1], 1 }

</bundles_post_ra>
